<compile_context>
chip_gen: v7x
topology: tpu7x:2x2x1
jax: 0.10.0
libtpu: 0.0.40
codegen_flags: <defaults>
</compile_context>

<pallas_src>
import functools

import jax
import jax.numpy as jnp
from jax.experimental import pallas as pl
from jax.experimental.pallas import tpu as pltpu

_LANE = 128


def _round_up(x, m):
    return ((x + m - 1) // m) * m


def _actor_kernel(x_ref, w1_ref, b1_ref, w2_ref, b2_ref, w3_ref, b3_ref, o_ref,
                  *, out_size):
    mm_dtype = w1_ref.dtype

    # ---- fc1 + relu (input read as f32 from HBM, cast in-register) ---------
    x = x_ref[...]
    if x.dtype != mm_dtype:
        x = x.astype(mm_dtype)
    h1 = jnp.dot(x, w1_ref[...], preferred_element_type=jnp.float32) + b1_ref[...]
    h1 = jnp.maximum(h1, 0.0)
    # dropout (p=0.2) is identity in eval mode

    # ---- fc2 + relu ---------------------------------------------------------
    h2 = jnp.dot(h1.astype(mm_dtype), w2_ref[...],
                 preferred_element_type=jnp.float32) + b2_ref[...]
    h2 = jnp.maximum(h2, 0.0)

    # ---- fc3 + softmax over lane-padded logits ------------------------------
    # Padded columns have weight 0 and bias -1e30 => exp underflows to 0 and
    # they do not perturb max / denominator. Only the real columns are stored.
    logits = jnp.dot(h2.astype(mm_dtype), w3_ref[...],
                     preferred_element_type=jnp.float32) + b3_ref[...]
    m = jnp.max(logits, axis=-1, keepdims=True)
    e = jnp.exp(logits - m)
    denom = jnp.sum(e, axis=-1, keepdims=True)
    probs = e / denom          # exact divide: keeps sampled probabilities exact
    o_ref[...] = probs[:, :out_size].astype(o_ref.dtype)


def _vmem_budget(tb, in_size, hidden, out_size, mm_dtype):
    """Conservative per-step VMEM estimate, clamped under v7x's 64 MiB."""
    bpe_w = jnp.dtype(mm_dtype).itemsize
    in_p = _round_up(in_size, _LANE)
    hid_p = _round_up(hidden, _LANE)
    out_p = _round_up(out_size, _LANE)
    x_bytes = 2 * tb * in_p * 4                      # double-buffered input (f32)
    o_bytes = 2 * tb * out_p * 4                     # double-buffered output
    w_bytes = 2 * (in_p * hid_p + hid_p * hid_p + hid_p * out_p) * bpe_w
    b_bytes = 2 * 3 * 8 * hid_p * 4                  # biases (sublane-padded)
    tmp_bytes = 4 * tb * hid_p * 4                   # h1 / h2 / logits / e
    est = x_bytes + o_bytes + w_bytes + b_bytes + tmp_bytes
    return int(min(max(2 * est, 32 << 20), 56 << 20))


@functools.partial(jax.jit, static_argnames=("block_b", "use_bf16"))
def actor_forward(state, w1, b1, w2, b2, w3, b3, *, block_b=1024, use_bf16=True):
    B, in_size = state.shape
    hidden = w1.shape[1]
    out_size = w3.shape[1]

    # ---- pad fc3 output dim to a full 128-lane row (matmul side only) ------
    out_pad = _round_up(max(out_size, _LANE), _LANE)
    w3p = jnp.pad(w3, ((0, 0), (0, out_pad - out_size)))
    b3p = jnp.pad(b3, ((0, 0), (0, out_pad - out_size)), constant_values=-1e30)

    # ---- batch tiling -------------------------------------------------------
    # Adaptive tile: minimize row padding; force >=2 grid steps when B > 16 so
    # megacore (v7x) sharding engages even for single-tile-sized batches.
    n_tiles = max(pl.cdiv(B, block_b), 2 if B > 16 else 1)
    tb = _round_up(pl.cdiv(B, n_tiles), 8)
    padded_b = _round_up(B, tb)
    if padded_b != B:
        state = jnp.pad(state, ((0, padded_b - B), (0, 0)))
    grid = (padded_b // tb,)

    # ---- matmul operand dtype (weights only; state is cast in-kernel) ------
    mm_dtype = jnp.bfloat16 if use_bf16 else jnp.float32
    w1c = w1.astype(mm_dtype)
    w2c = w2.astype(mm_dtype)
    w3c = w3p.astype(mm_dtype)

    const = lambda shape: pl.BlockSpec(shape, lambda i: (0, 0))
    kernel = functools.partial(_actor_kernel, out_size=out_size)

    out = pl.pallas_call(
        kernel,
        grid=grid,
        out_shape=jax.ShapeDtypeStruct((padded_b, out_size), jnp.float32),
        in_specs=[
            pl.BlockSpec((tb, in_size), lambda i: (i, 0)),
            const(w1c.shape), const(b1.shape),
            const(w2c.shape), const(b2.shape),
            const(w3c.shape), const(b3p.shape),
        ],
        out_specs=pl.BlockSpec((tb, out_size), lambda i: (i, 0)),
        compiler_params=pltpu.CompilerParams(
            dimension_semantics=("parallel",),
            vmem_limit_bytes=_vmem_budget(tb, in_size, hidden, out_size, mm_dtype)),
    )(state, w1c, b1, w2c, b2, w3c, b3p)

    return out if padded_b == B else out[:B]


def _actor_reference(state, w1, b1, w2, b2, w3, b3):
    h1 = jnp.maximum(state @ w1 + b1, 0.0)
    h2 = jnp.maximum(h1 @ w2 + b2, 0.0)
    logits = h2 @ w3 + b3
    return jax.nn.softmax(logits, axis=-1)


def xavier_uniform(key, fan_in, fan_out, gain=1.0):
    bound = gain * jnp.sqrt(6.0 / (fan_in + fan_out))
    # PyTorch weight is (out, in); we build (in, out) directly (same dist).
    return jax.random.uniform(
        key, (fan_in, fan_out), dtype=jnp.float32, minval=-bound, maxval=bound
    )


def init_actor_params(key, input_size, hidden_size=128, output_size=3):
    k1, k2, k3 = jax.random.split(key, 3)
    w1 = xavier_uniform(k1, input_size, hidden_size)
    b1 = jnp.zeros((1, hidden_size), jnp.float32)
    w2 = xavier_uniform(k2, hidden_size, hidden_size)
    b2 = jnp.zeros((1, hidden_size), jnp.float32)
    # fc3 is re-initialized with gain=0.1 in the PyTorch module
    w3 = xavier_uniform(k3, hidden_size, output_size, gain=0.1)
    b3 = jnp.zeros((1, output_size), jnp.float32)
    return w1, b1, w2, b2, w3, b3


if __name__ == "__main__":
    key = jax.random.PRNGKey(0)
    k_state, k_params = jax.random.split(key)

    batch = 2
    input_size = 32
    hidden_size = 128
    output_size = 3

    state = jax.random.normal(k_state, (batch, input_size), dtype=jnp.float32)
    params = init_actor_params(k_params, input_size, hidden_size, output_size)

    # bf16-matmul path (default)
    probs = jax.block_until_ready(actor_forward(state, *params))
    ref = _actor_reference(state, *params)
    assert probs.shape == (batch, output_size)
    assert bool(jnp.allclose(jnp.sum(probs, axis=-1), 1.0, atol=1e-3))
    assert bool(jnp.allclose(probs, ref, atol=2e-2))

    # f32 parity path (flag-gated, tighter tolerance)
    probs_f32 = jax.block_until_ready(actor_forward(state, *params, use_bf16=False))
    assert bool(jnp.allclose(probs_f32, ref, atol=5e-3))

    # larger, awkward batch: grid > 1 (exercises megacore split + tail padding)
    big_state = jax.random.normal(k_state, (300, input_size), dtype=jnp.float32)
    big = jax.block_until_ready(actor_forward(big_state, *params))
    big_ref = _actor_reference(big_state, *params)
    assert big.shape == (300, output_size)
    assert bool(jnp.allclose(jnp.sum(big, axis=-1), 1.0, atol=1e-3))
    assert bool(jnp.allclose(big, big_ref, atol=2e-2))

    print("KERNEL_OK")
</pallas_src>

<mosaic_0001>
module attributes {stable_mosaic.version = 11 : i64} {
  func.func @_actor_kernel(%arg0: i32, %arg1: memref<8x32xf32, #tpu.memory_space<vmem>>, %arg2: memref<32x128xbf16, #tpu.memory_space<vmem>>, %arg3: memref<1x128xf32, #tpu.memory_space<vmem>>, %arg4: memref<128x128xbf16, #tpu.memory_space<vmem>>, %arg5: memref<1x128xf32, #tpu.memory_space<vmem>>, %arg6: memref<128x128xbf16, #tpu.memory_space<vmem>>, %arg7: memref<1x128xf32, #tpu.memory_space<vmem>>, %arg8: memref<8x3xf32, #tpu.memory_space<vmem>>) attributes {dimension_semantics = [#tpu.dimension_semantics<parallel>], iteration_bounds = array<i64: 1>, scalar_prefetch = 0 : i64, scratch_operands = 0 : i64, tpu.core_type = #tpu.core_type<tc>, window_params = [{transform_indices = @transform_0, window_bounds = array<i64: 8, 32>}, {pipeline_mode = #tpu.pipeline_mode<synchronous>, transform_indices = @transform_1, window_bounds = array<i64: 32, 128>}, {pipeline_mode = #tpu.pipeline_mode<synchronous>, transform_indices = @transform_2, window_bounds = array<i64: 1, 128>}, {pipeline_mode = #tpu.pipeline_mode<synchronous>, transform_indices = @transform_3, window_bounds = array<i64: 128, 128>}, {pipeline_mode = #tpu.pipeline_mode<synchronous>, transform_indices = @transform_4, window_bounds = array<i64: 1, 128>}, {pipeline_mode = #tpu.pipeline_mode<synchronous>, transform_indices = @transform_5, window_bounds = array<i64: 128, 128>}, {pipeline_mode = #tpu.pipeline_mode<synchronous>, transform_indices = @transform_6, window_bounds = array<i64: 1, 128>}, {transform_indices = @transform_7, window_bounds = array<i64: 8, 3>}]} {
    %c0 = arith.constant 0 : index
    %c0_0 = arith.constant 0 : index
    %0 = vector.load %arg1[%c0, %c0_0] : memref<8x32xf32, #tpu.memory_space<vmem>>, vector<8x32xf32>
    %1 = arith.truncf %0 : vector<8x32xf32> to vector<8x32xbf16>
    %c0_1 = arith.constant 0 : index
    %c0_2 = arith.constant 0 : index
    %2 = vector.load %arg2[%c0_1, %c0_2] : memref<32x128xbf16, #tpu.memory_space<vmem>>, vector<32x128xbf16>
    %cst = arith.constant dense<0.000000e+00> : vector<8x128xf32>
    %3 = tpu.matmul %1, %2, %cst {dimension_numbers = #tpu.dot_dimension_numbers<[1], [0], [0], [1], [0, 0, 1, 1], [], []>} : vector<8x32xbf16>, vector<32x128xbf16>, vector<8x128xf32> -> vector<8x128xf32>
    %c0_3 = arith.constant 0 : index
    %c0_4 = arith.constant 0 : index
    %4 = vector.load %arg3[%c0_3, %c0_4] : memref<1x128xf32, #tpu.memory_space<vmem>>, vector<1x128xf32>
    %5 = vector.broadcast %4 : vector<1x128xf32> to vector<8x128xf32>
    %6 = arith.addf %3, %5 : vector<8x128xf32>
    %cst_5 = arith.constant 0.000000e+00 : f32
    %7 = vector.broadcast %cst_5 : f32 to vector<8x128xf32>
    %8 = arith.maximumf %6, %7 : vector<8x128xf32>
    %9 = arith.truncf %8 : vector<8x128xf32> to vector<8x128xbf16>
    %c0_6 = arith.constant 0 : index
    %c0_7 = arith.constant 0 : index
    %10 = vector.load %arg4[%c0_6, %c0_7] : memref<128x128xbf16, #tpu.memory_space<vmem>>, vector<128x128xbf16>
    %cst_8 = arith.constant dense<0.000000e+00> : vector<8x128xf32>
    %11 = tpu.matmul %9, %10, %cst_8 {dimension_numbers = #tpu.dot_dimension_numbers<[1], [0], [0], [1], [0, 0, 1, 1], [], []>} : vector<8x128xbf16>, vector<128x128xbf16>, vector<8x128xf32> -> vector<8x128xf32>
    %c0_9 = arith.constant 0 : index
    %c0_10 = arith.constant 0 : index
    %12 = vector.load %arg5[%c0_9, %c0_10] : memref<1x128xf32, #tpu.memory_space<vmem>>, vector<1x128xf32>
    %13 = vector.broadcast %12 : vector<1x128xf32> to vector<8x128xf32>
    %14 = arith.addf %11, %13 : vector<8x128xf32>
    %cst_11 = arith.constant 0.000000e+00 : f32
    %15 = vector.broadcast %cst_11 : f32 to vector<8x128xf32>
    %16 = arith.maximumf %14, %15 : vector<8x128xf32>
    %17 = arith.truncf %16 : vector<8x128xf32> to vector<8x128xbf16>
    %c0_12 = arith.constant 0 : index
    %c0_13 = arith.constant 0 : index
    %18 = vector.load %arg6[%c0_12, %c0_13] : memref<128x128xbf16, #tpu.memory_space<vmem>>, vector<128x128xbf16>
    %cst_14 = arith.constant dense<0.000000e+00> : vector<8x128xf32>
    %19 = tpu.matmul %17, %18, %cst_14 {dimension_numbers = #tpu.dot_dimension_numbers<[1], [0], [0], [1], [0, 0, 1, 1], [], []>} : vector<8x128xbf16>, vector<128x128xbf16>, vector<8x128xf32> -> vector<8x128xf32>
    %c0_15 = arith.constant 0 : index
    %c0_16 = arith.constant 0 : index
    %20 = vector.load %arg7[%c0_15, %c0_16] : memref<1x128xf32, #tpu.memory_space<vmem>>, vector<1x128xf32>
    %21 = vector.broadcast %20 : vector<1x128xf32> to vector<8x128xf32>
    %22 = arith.addf %19, %21 : vector<8x128xf32>
    %cst_17 = arith.constant dense<0xFF800000> : vector<8xf32>
    %23 = vector.multi_reduction <maximumf>, %22, %cst_17 [1] : vector<8x128xf32> to vector<8xf32>
    %24 = vector.shape_cast %23 : vector<8xf32> to vector<8x1xf32>
    %25 = vector.broadcast %24 : vector<8x1xf32> to vector<8x128xf32>
    %26 = arith.subf %22, %25 : vector<8x128xf32>
    %27 = math.exp %26 : vector<8x128xf32>
    %cst_18 = arith.constant dense<0.000000e+00> : vector<8xf32>
    %28 = vector.multi_reduction <add>, %27, %cst_18 [1] : vector<8x128xf32> to vector<8xf32>
    %29 = vector.shape_cast %28 : vector<8xf32> to vector<8x1xf32>
    %30 = vector.broadcast %29 : vector<8x1xf32> to vector<8x128xf32>
    %31 = arith.divf %27, %30 : vector<8x128xf32>
    %32 = vector.extract_strided_slice %31 {offsets = [0, 0], sizes = [8, 3], strides = [1, 1]} : vector<8x128xf32> to vector<8x3xf32>
    %c0_19 = arith.constant 0 : index
    %c0_20 = arith.constant 0 : index
    %33 = vector.load %arg8[%c0_19, %c0_20] : memref<8x3xf32, #tpu.memory_space<vmem>>, vector<8x3xf32>
    tpu.vector_store %arg8[%c0_19, %c0_20], %32 {strides = array<i32>} : memref<8x3xf32, #tpu.memory_space<vmem>>, vector<8x3xf32>,
    return
  }
  func.func @transform_0(%arg0: i32) -> (i32, i32) {
    %c0_i32 = arith.constant 0 : i32
    %c0_i32_0 = arith.constant 0 : i32
    return %arg0, %c0_i32 : i32, i32
  }
  func.func @transform_1(%arg0: i32) -> (i32, i32) {
    %c0_i32 = arith.constant 0 : i32
    %c0_i32_0 = arith.constant 0 : i32
    %c0_i32_1 = arith.constant 0 : i32
    return %c0_i32, %c0_i32_0 : i32, i32
  }
  func.func @transform_2(%arg0: i32) -> (i32, i32) {
    %c0_i32 = arith.constant 0 : i32
    %c0_i32_0 = arith.constant 0 : i32
    %c0_i32_1 = arith.constant 0 : i32
    return %c0_i32, %c0_i32_0 : i32, i32
  }
  func.func @transform_3(%arg0: i32) -> (i32, i32) {
    %c0_i32 = arith.constant 0 : i32
    %c0_i32_0 = arith.constant 0 : i32
    %c0_i32_1 = arith.constant 0 : i32
    return %c0_i32, %c0_i32_0 : i32, i32
  }
  func.func @transform_4(%arg0: i32) -> (i32, i32) {
    %c0_i32 = arith.constant 0 : i32
    %c0_i32_0 = arith.constant 0 : i32
    %c0_i32_1 = arith.constant 0 : i32
    return %c0_i32, %c0_i32_0 : i32, i32
  }
  func.func @transform_5(%arg0: i32) -> (i32, i32) {
    %c0_i32 = arith.constant 0 : i32
    %c0_i32_0 = arith.constant 0 : i32
    %c0_i32_1 = arith.constant 0 : i32
    return %c0_i32, %c0_i32_0 : i32, i32
  }
  func.func @transform_6(%arg0: i32) -> (i32, i32) {
    %c0_i32 = arith.constant 0 : i32
    %c0_i32_0 = arith.constant 0 : i32
    %c0_i32_1 = arith.constant 0 : i32
    return %c0_i32, %c0_i32_0 : i32, i32
  }
  func.func @transform_7(%arg0: i32) -> (i32, i32) {
    %c0_i32 = arith.constant 0 : i32
    %c0_i32_0 = arith.constant 0 : i32
    return %arg0, %c0_i32 : i32, i32
  }
}

</mosaic_0001>

<bundles_post_ra>
// kernel: actor_forward.1
= control target key start
LH: loop header
LB: loop body
LE: loop exit
PB: predicated region body
PF: predicated region fallthrough
CT: control target
= control target key end

     0   :  { %v452_v0 = vmov 0.0   ;;  %vm453_vm0 = vmmov 0   ;;  %vm52_vm1 = vcmask 261120   ;;  %vm331_vm2 = vcmask 23552   ;;  %s587_s1 = inlined_call_operand.vmem [shape: bf16[32,128], index: 1, kind: input, shape index: {}]   ;;  %s588_s0 = inlined_call_operand.vmem [shape: f32[8,32], index: 0, kind: input, shape index: {}]   ;;  %s589_s3 = inlined_call_operand.vmem [shape: bf16[128,128], index: 3, kind: input, shape index: {}]   ;;  %s590_s5 = inlined_call_operand.vmem [shape: bf16[128,128], index: 5, kind: input, shape index: {}]   ;;  %s591_s2 = inlined_call_operand.vmem [shape: f32[1,128], index: 2, kind: input, shape index: {}]   ;;  %s592_s4 = inlined_call_operand.vmem [shape: f32[1,128], index: 4, kind: input, shape index: {}]   ;;  %s593_s6 = inlined_call_operand.vmem [shape: f32[1,128], index: 6, kind: input, shape index: {}]   ;;  %s594_s7 = inlined_call_operand.vmem [shape: f32[8,3], index: 7, kind: output, shape index: {}]  }
   0x1   :  { %380 = vmatprep.subr.bf16.mxu0 %v452_v0  ;;  %v430_v1 = vld [vmem:[%s587_s1] sm:$0xff]   ;;  %384 = vmatprep.mubr.msk.bf16.mxu0 %vm453_vm0, %v452_v0  ;;  %v431_v2 = vld [vmem:[%s587_s1 + $0x8] sm:$0xff]   ;;  %v434_v7 = vld [vmem:[%s589_s3 + $0x10] sm:$0xff]  }
   0x2   :  { %388 = vmatprep.subr.bf16.mxu1 %v452_v0  ;;  %404 = vmatprep.mubr.msk.bf16.mxu1 %vm453_vm0, %v452_v0  ;;  %v27_v3 = vld [vmem:[%s588_s0] sm:$0xff]  ;;  %v433_v6 = vld [vmem:[%s589_s3 + $0x8] sm:$0xff]   ;;  %v435_v8 = vld [vmem:[%s589_s3 + $0x18] sm:$0xff]  }
   0x3   :  { %381 = vmatpush3.bf16.msra.mxu0 %v430_v1  ;;  %v432_v4 = vld [vmem:[%s589_s3] sm:$0xff]   ;;  %v28_v5 = vpack.c.bf16 %v27_v3, %v27_v3  ;;  %v437_v10 = vld [vmem:[%s589_s3 + $0x28] sm:$0xff]   ;;  %v438_v11 = vld [vmem:[%s589_s3 + $0x30] sm:$0xff]  }
   0x4   :  { %382 = vmatprep.subr.bf16.mxu0 %v452_v0  ;;  %389 = vmatpush3.bf16.msra.mxu1 %v432_v4  ;;  %v436_v9 = vld [vmem:[%s589_s3 + $0x20] sm:$0xff]   ;;  %v439_v12 = vld [vmem:[%s589_s3 + $0x38] sm:$0xff]   ;;  %v441_v14 = vld [vmem:[%s590_s5 + $0x8] sm:$0xff]  }
   0x5   :  { %390 = vmatprep.subr.bf16.mxu1 %v452_v0  ;;  %v440_v13 = vld [vmem:[%s590_s5] sm:$0xff]   ;;  %v442_v15 = vld [vmem:[%s590_s5 + $0x10] sm:$0xff]   ;;  %v443_v16 = vld [vmem:[%s590_s5 + $0x18] sm:$0xff]  }
   0x6   :  { %v444_v17 = vld [vmem:[%s590_s5 + $0x20] sm:$0xff]   ;;  %v445_v18 = vld [vmem:[%s590_s5 + $0x28] sm:$0xff]   ;;  %v446_v27 = vld [vmem:[%s590_s5 + $0x30] sm:$0xff]  }
   0x7   :  { %383 = vmatpush3.bf16.msra.mxu0 %v431_v2  ;;  %v337_v19 = vld [vmem:[%s591_s2] ss:$0 sm:$0xff]  ;;  %v447_v28 = vld [vmem:[%s590_s5 + $0x38] sm:$0xff]  }
   0x8   :  { %408 = vmatprep.subr.bf16.mxu0 %v452_v0  ;;  %391 = vmatpush3.bf16.msra.mxu1 %v433_v6  ;;  %v341_v29 = vld [vmem:[%s592_s4] ss:$0 sm:$0xff] }
   0x9   :  { %392 = vmatprep.subr.bf16.mxu1 %v452_v0  ;;  %v350_v37 = vld [vmem:[%s593_s6] ss:$0 sm:$0xff] }
   0xa   :  { %385 = vmatmul.mubr.msk.bf16.vlgmr.msra.gmra.mrb[0].mxu0 %vm52_vm1, %v28_v5 }
   0xb   :  { %424 = vmatprep.mubr.msk.bf16.mxu0 %vm453_vm0, %v452_v0  ;;  %409 = vmatpush3.bf16.msra.mxu0 %v440_v13 }
   0xc   :  { %393 = vmatpush3.bf16.msra.mxu1 %v434_v7  ;;  %410 = vmatprep.subr.bf16.mxu0 %v452_v0 }
   0xd   :  { %394 = vmatprep.subr.bf16.mxu1 %v452_v0 }
   0xf   :  { %411 = vmatpush3.bf16.msra.mxu0 %v441_v14 }
  0x10   :  { %395 = vmatpush3.bf16.msra.mxu1 %v435_v8  ;;  %412 = vmatprep.subr.bf16.mxu0 %v452_v0 }
  0x11   :  { %396 = vmatprep.subr.bf16.mxu1 %v452_v0 }
  0x13   :  { %413 = vmatpush3.bf16.msra.mxu0 %v442_v15 }
  0x14   :  { %397 = vmatpush3.bf16.msra.mxu1 %v436_v9  ;;  %414 = vmatprep.subr.bf16.mxu0 %v452_v0 }
  0x15   :  { %398 = vmatprep.subr.bf16.mxu1 %v452_v0 }
  0x17   :  { %415 = vmatpush3.bf16.msra.mxu0 %v443_v16 }
  0x18   :  { %399 = vmatpush3.bf16.msra.mxu1 %v437_v10  ;;  %416 = vmatprep.subr.bf16.mxu0 %v452_v0 }
  0x19   :  { %400 = vmatprep.subr.bf16.mxu1 %v452_v0 }
  0x1b   :  { %417 = vmatpush3.bf16.msra.mxu0 %v444_v17 }
  0x1c   :  { %401 = vmatpush3.bf16.msra.mxu1 %v438_v11  ;;  %418 = vmatprep.subr.bf16.mxu0 %v452_v0 }
  0x1d   :  { %402 = vmatprep.subr.bf16.mxu1 %v452_v0 }
  0x1f   :  { %419 = vmatpush3.bf16.msra.mxu0 %v445_v18 }
  0x20   :  { %403 = vmatpush3.bf16.msra.mxu1 %v439_v12  ;;  %420 = vmatprep.subr.bf16.mxu0 %v452_v0 }
  0x23   :  { %421 = vmatpush3.bf16.msra.mxu0 %v446_v27 }
  0x24   :  { %422 = vmatprep.subr.bf16.mxu0 %v452_v0 }
  0x27   :  { %423 = vmatpush3.bf16.msra.mxu0 %v447_v28 }
  0xdd   :  { %v90_v20 = vpop.f32.mrb[0].mxu0 }
  0xde   :  { %v91_v21 = vadd.f32 %v337_v19, %v90_v20  ;;  %v386_v22 = vpop.f32.mrb[1].mxu0 }
  0xdf   :  { %v93_v23 = vpop.f32.mrb[2].mxu0 }
  0xe0   :  { %v96_v24 = vmax.f32 %v91_v21, 0.0  ;;  %v387_v25 = vpop.f32.mrb[3].mxu0 }
  0xe2   :  { %v97_v26 = vpack.c.bf16 %v96_v24, %v96_v24 }
  0xe4   :  { %405 = vmatmul.mubr.bf16.vlgmr.msra.gmra.mrb[0].mxu1 %v97_v26 }
 0x1b7   :  { %v203_v30 = vpop.f32.mrb[0].mxu1 }
 0x1b8   :  { %v204_v31 = vadd.f32 %v341_v29, %v203_v30  ;;  %v406_v32 = vpop.f32.mrb[1].mxu1 }
 0x1b9   :  { %v206_v33 = vpop.f32.mrb[2].mxu1 }
 0x1ba   :  { %v209_v34 = vmax.f32 %v204_v31, 0.0  ;;  %v407_v35 = vpop.f32.mrb[3].mxu1 }
 0x1bc   :  { %v210_v36 = vpack.c.bf16 %v209_v34, %v209_v34 }
 0x1be   :  { %425 = vmatmul.mubr.bf16.vlgmr.msra.gmra.mrb[4].mxu0 %v210_v36 }
 0x291   :  { %v316_v38 = vpop.f32.mrb[4].mxu0 }
 0x292   :  { %v317_v39 = vadd.f32 %v350_v37, %v316_v38  ;;  %v426_v40 = vpop.f32.mrb[5].mxu0 }
 0x293   :  { %v319_v41 = vpop.f32.mrb[6].mxu0 }
 0x294   :  { %322 = vmax.xlane.f32.xlu0 %v317_v39  ;;  %v427_v42 = vpop.f32.mrb[7].mxu0 }
 0x321   :  { %v323_v43 = vpop.xlane.xlu0 %322 }
 0x322   :  { %v324_v44 = vsub.f32 %v317_v39, %v323_v43 }
 0x324   :  { %v325_v45 = vmul.f32 1.442695, %v324_v44 }
 0x326   :  { %448 = vpow2.f32 %v325_v45 }
 0x330   :  { %v449_v46 = vpop.eup %448 }
 0x331   :  { %327 = vadd.xlane.f32.xlu0 %v449_v46 }
 0x3be   :  { %v328_v47 = vpop.xlane.xlu0 %327 }
 0x3bf   :  { %450 = vrcp.f32 %v328_v47 }
 0x3c9   :  { %v451_v48 = vpop.eup %450 }
 0x3ca   :  { %v330_v49 = vmul.f32 %v451_v48, %v449_v46 }
 0x3cc   :  { %332 = vst.msk [vmem:[%s594_s7] sm:$0xff] %vm331_vm2, %v330_v49 }

</bundles_post_ra>
